<compile_context>
chip_gen: v6e
topology: v6e:2x2x1
jax: 0.10.0
libtpu: 0.0.40
codegen_flags: <defaults>
</compile_context>

<pallas_src>
import functools

import jax
import jax.numpy as jnp
from jax.experimental import pallas as pl
from jax.experimental.pallas import tpu as pltpu


def _round_up(x, m):
    return ((x + m - 1) // m) * m


def _mlp_kernel(*refs, n_hidden, minmax):
    # refs layout:
    #   u, m, W1u^T, W1m^T, b1, (Wk^T, bk) * (n_hidden-1), w_fc, b_fc, out
    u_ref, m_ref, w1u_ref, w1m_ref, b1_ref = refs[:5]
    pos = 5
    rest = []
    for _ in range(n_hidden - 1):
        rest.append((refs[pos], refs[pos + 1]))
        pos += 2
    wfc_ref, bfc_ref, out_ref = refs[pos], refs[pos + 1], refs[pos + 2]

    # First layer, computed transposed:  hT[H1, TB] = W1u^T @ u^T + W1m^T @ m^T
    # dot_general contracts the F (lane) axis of both operands; bf16 operands,
    # f32 accumulation on the MXU.
    dims = (((1,), (1,)), ((), ()))
    ht = jax.lax.dot_general(w1u_ref[...], u_ref[...], dims,
                             preferred_element_type=jnp.float32)
    ht += jax.lax.dot_general(w1m_ref[...], m_ref[...], dims,
                              preferred_element_type=jnp.float32)
    ht = jnp.maximum(ht + b1_ref[...], 0.0)          # [H1, TB] f32, b1 is [H1,1]

    # Remaining hidden layers (all weights VMEM-resident): bf16 MXU matmuls,
    # f32 accumulate, f32 bias + ReLU on the VPU.
    for w_ref, b_ref in rest:                        # w: [Hk, Hk-1] bf16
        ht = jnp.dot(w_ref[...], ht.astype(jnp.bfloat16),
                     preferred_element_type=jnp.float32)
        ht = jnp.maximum(ht + b_ref[...], 0.0)       # [Hk, TB] f32

    # fc head (H_last -> 1): VPU multiply by w_fc [H_last, 1] + sublane
    # reduction over H -> lane-dense [1, TB] logits. fc bias is an SMEM scalar.
    logit = jnp.sum(ht * wfc_ref[...], axis=0, keepdims=True) + bfc_ref[0]

    out = jax.nn.sigmoid(logit)                      # f32 epilogue (v5e-safe)
    if minmax is not None:
        min_rating, max_rating = minmax
        out = out * (max_rating - min_rating + 1.0) + (min_rating - 0.5)

    out_ref[...] = out.astype(out_ref.dtype)         # lane-dense [1, TB] store


def embedding_net_forward(users, movies, params, minmax=None, block_rows=2048):
    """Forward pass of EmbeddingNet (eval mode: all dropouts are identity).

    users, movies: int32 [B] index vectors.
    params: dict with
      'u_emb' [n_users, F], 'm_emb' [n_movies, F],
      'hidden_w' list of [n_in, n_out], 'hidden_b' list of [n_out],
      'fc_w' [H_last, 1], 'fc_b' [1].
    """
    f = params["u_emb"].shape[1]
    hw = params["hidden_w"]
    hb = params["hidden_b"]
    n_hidden = len(hw)
    dims_h = [int(w.shape[1]) for w in hw]
    h1, h_last = dims_h[0], dims_h[-1]

    # Embedding lookups in bf16 (glue, plain JAX). No concat: the two halves
    # go into the kernel separately.
    u_vecs = jnp.take(params["u_emb"].astype(jnp.bfloat16), users, axis=0)
    m_vecs = jnp.take(params["m_emb"].astype(jnp.bfloat16), movies, axis=0)
    b = int(u_vecs.shape[0])

    # Balanced batch tiling: tiles are multiples of 128 (lane-dense output,
    # bf16 sublane packing) and padding waste is bounded by ~128 rows/tile.
    n_tiles = max(1, -(-b // block_rows))
    tb = _round_up(-(-b // n_tiles), 128)
    b_pad = tb * n_tiles
    if b_pad != b:
        u_vecs = jnp.pad(u_vecs, ((0, b_pad - b), (0, 0)))
        m_vecs = jnp.pad(m_vecs, ((0, b_pad - b), (0, 0)))

    # Weights: split + transpose W1 halves (bf16 MXU operands); biases / fc
    # weight in f32 for the epilogue; fc bias as a scalar in SMEM.
    w1 = hw[0].astype(jnp.bfloat16)                   # [2F, H1]
    w1_u_t = w1[:f].T                                 # [H1, F] bf16
    w1_m_t = w1[f:].T                                 # [H1, F] bf16
    b1 = hb[0].reshape(h1, 1).astype(jnp.float32)

    rest_ops, rest_specs = [], []
    for k in range(1, n_hidden):
        hk_in, hk_out = int(hw[k].shape[0]), int(hw[k].shape[1])
        rest_ops.append(hw[k].T.astype(jnp.bfloat16))                 # [Hk, Hk-1]
        rest_ops.append(hb[k].reshape(hk_out, 1).astype(jnp.float32))  # [Hk, 1]
        rest_specs.append(pl.BlockSpec((hk_out, hk_in), lambda i: (0, 0)))
        rest_specs.append(pl.BlockSpec((hk_out, 1), lambda i: (0, 0)))

    w_fc = params["fc_w"].reshape(h_last, 1).astype(jnp.float32)
    b_fc = params["fc_b"].reshape(1).astype(jnp.float32)

    kernel = functools.partial(_mlp_kernel, n_hidden=n_hidden, minmax=minmax)

    flops = 2 * b_pad * (2 * f) * dims_h[0]
    for k in range(1, n_hidden):
        flops += 2 * b_pad * dims_h[k - 1] * dims_h[k]
    flops += 2 * b_pad * dims_h[-1]
    weight_bytes = (sum(int(w.size) * 2 for w in hw)
                    + sum(int(bb.size) * 4 for bb in hb)
                    + (h_last + 1) * 4)
    cost = pl.CostEstimate(
        flops=int(flops),
        transcendentals=int(b_pad),
        bytes_accessed=int(b_pad * 2 * f * 2        # bf16 activations in
                           + weight_bytes           # resident weights
                           + b_pad * 4),            # f32 output
    )

    out = pl.pallas_call(
        kernel,
        out_shape=jax.ShapeDtypeStruct((1, b_pad), jnp.float32),
        grid=(n_tiles,),
        in_specs=[
            pl.BlockSpec((tb, f), lambda i: (i, 0)),            # u block
            pl.BlockSpec((tb, f), lambda i: (i, 0)),            # m block
            pl.BlockSpec((h1, f), lambda i: (0, 0)),            # W1u^T (resident)
            pl.BlockSpec((h1, f), lambda i: (0, 0)),            # W1m^T (resident)
            pl.BlockSpec((h1, 1), lambda i: (0, 0)),            # b1
            *rest_specs,                                        # deeper layers
            pl.BlockSpec((h_last, 1), lambda i: (0, 0)),        # w_fc
            pl.BlockSpec(memory_space=pltpu.MemorySpace.SMEM),  # fc bias scalar
        ],
        out_specs=pl.BlockSpec((1, tb), lambda i: (0, i)),      # lane-dense out
        compiler_params=pltpu.CompilerParams(
            dimension_semantics=("parallel",),
            vmem_limit_bytes=32 * 1024 * 1024,
        ),
        cost_estimate=cost,
    )(u_vecs, m_vecs, w1_u_t, w1_m_t, b1, *rest_ops, w_fc, b_fc)

    return out[0, :b].reshape(b, 1)


def init_params(key, n_users, n_movies, n_factors, hidden):
    hidden = list(hidden)
    keys = list(jax.random.split(key, 4 + 2 * len(hidden)))
    # nn.Embedding default init: N(0, 1)
    u_emb = jax.random.normal(keys[0], (n_users, n_factors), jnp.float32)
    m_emb = jax.random.normal(keys[1], (n_movies, n_factors), jnp.float32)
    hidden_w, hidden_b = [], []
    n_in = 2 * n_factors
    ki = 2
    for n_out in hidden:
        lim = 1.0 / (n_in ** 0.5)                   # nn.Linear-style uniform init
        hidden_w.append(jax.random.uniform(keys[ki], (n_in, n_out),
                                           jnp.float32, -lim, lim))
        hidden_b.append(jax.random.uniform(keys[ki + 1], (n_out,),
                                           jnp.float32, -lim, lim))
        ki += 2
        n_in = n_out
    lim = 1.0 / (n_in ** 0.5)
    fc_w = jax.random.uniform(keys[ki], (n_in, 1), jnp.float32, -lim, lim)
    fc_b = jax.random.uniform(keys[ki + 1], (1,), jnp.float32, -lim, lim)
    return {"u_emb": u_emb, "m_emb": m_emb,
            "hidden_w": hidden_w, "hidden_b": hidden_b,
            "fc_w": fc_w, "fc_b": fc_b}


def _reference_forward(users, movies, params, minmax=None):
    """Plain-JAX reference (eval mode), mirroring the kernel's bf16 rounding
    of matmul operands with f32 accumulation."""
    def bf(x):
        return x.astype(jnp.bfloat16).astype(jnp.float32)

    feats = jnp.concatenate([jnp.take(bf(params["u_emb"]), users, axis=0),
                             jnp.take(bf(params["m_emb"]), movies, axis=0)],
                            axis=1)
    x = feats
    for w, b in zip(params["hidden_w"], params["hidden_b"]):
        x = jnp.maximum(bf(x) @ bf(w) + b, 0.0)
    out = jax.nn.sigmoid(x @ params["fc_w"] + params["fc_b"])
    if minmax is not None:
        min_rating, max_rating = minmax
        out = out * (max_rating - min_rating + 1.0) + (min_rating - 0.5)
    return out


if __name__ == "__main__":
    # Small deterministic configuration consistent with EmbeddingNet.
    n_users, n_movies = 16, 24
    n_factors = 32          # -> concat-feature width 64
    hidden = (64, 32)       # two-layer hidden stack (exercises the fused MLP)
    batch = 8

    key = jax.random.PRNGKey(0)
    k_params, k_u, k_m = jax.random.split(key, 3)

    params = init_params(k_params, n_users, n_movies, n_factors, hidden)
    users = jax.random.randint(k_u, (batch,), 0, n_users, jnp.int32)
    movies = jax.random.randint(k_m, (batch,), 0, n_movies, jnp.int32)

    out = embedding_net_forward(users, movies, params, minmax=(1.0, 5.0))
    out = jax.block_until_ready(out)
    ref = _reference_forward(users, movies, params, minmax=(1.0, 5.0))
    assert out.shape == (batch, 1)
    assert jnp.allclose(out, ref, atol=1e-3, rtol=1e-3), (out, ref)

    # Single-hidden-layer path (module default style, hidden=[H]).
    params1 = init_params(k_params, n_users, n_movies, n_factors, (32,))
    out1 = jax.block_until_ready(
        embedding_net_forward(users, movies, params1, minmax=(1.0, 5.0)))
    ref1 = _reference_forward(users, movies, params1, minmax=(1.0, 5.0))
    assert out1.shape == (batch, 1)
    assert jnp.allclose(out1, ref1, atol=1e-3, rtol=1e-3), (out1, ref1)

    print("KERNEL_OK")
</pallas_src>

<mosaic_0001>
module attributes {stable_mosaic.version = 11 : i64} {
  func.func @_mlp_kernel(%arg0: i32, %arg1: memref<128x32xbf16, #tpu.memory_space<vmem>>, %arg2: memref<128x32xbf16, #tpu.memory_space<vmem>>, %arg3: memref<64x32xbf16, #tpu.memory_space<vmem>>, %arg4: memref<64x32xbf16, #tpu.memory_space<vmem>>, %arg5: memref<64x1xf32, #tpu.memory_space<vmem>>, %arg6: memref<32x64xbf16, #tpu.memory_space<vmem>>, %arg7: memref<32x1xf32, #tpu.memory_space<vmem>>, %arg8: memref<32x1xf32, #tpu.memory_space<vmem>>, %arg9: memref<1xf32, #tpu.memory_space<smem>>, %arg10: memref<1x128xf32, #tpu.memory_space<vmem>>) attributes {dimension_semantics = [#tpu.dimension_semantics<parallel>], iteration_bounds = array<i64: 1>, scalar_prefetch = 0 : i64, scratch_operands = 0 : i64, tpu.core_type = #tpu.core_type<tc>, window_params = [{transform_indices = @transform_0, window_bounds = array<i64: 128, 32>}, {transform_indices = @transform_1, window_bounds = array<i64: 128, 32>}, {pipeline_mode = #tpu.pipeline_mode<synchronous>, transform_indices = @transform_2, window_bounds = array<i64: 64, 32>}, {pipeline_mode = #tpu.pipeline_mode<synchronous>, transform_indices = @transform_3, window_bounds = array<i64: 64, 32>}, {pipeline_mode = #tpu.pipeline_mode<synchronous>, transform_indices = @transform_4, window_bounds = array<i64: 64, 1>}, {pipeline_mode = #tpu.pipeline_mode<synchronous>, transform_indices = @transform_5, window_bounds = array<i64: 32, 64>}, {pipeline_mode = #tpu.pipeline_mode<synchronous>, transform_indices = @transform_6, window_bounds = array<i64: 32, 1>}, {pipeline_mode = #tpu.pipeline_mode<synchronous>, transform_indices = @transform_7, window_bounds = array<i64: 32, 1>}, {transform_indices = @transform_8, window_bounds = array<i64: 1>}, {transform_indices = @transform_9, window_bounds = array<i64: 1, 128>}]} {
    %c0 = arith.constant 0 : index
    %c0_0 = arith.constant 0 : index
    %0 = vector.load %arg3[%c0, %c0_0] : memref<64x32xbf16, #tpu.memory_space<vmem>>, vector<64x32xbf16>
    %c0_1 = arith.constant 0 : index
    %c0_2 = arith.constant 0 : index
    %1 = vector.load %arg1[%c0_1, %c0_2] : memref<128x32xbf16, #tpu.memory_space<vmem>>, vector<128x32xbf16>
    %cst = arith.constant dense<0.000000e+00> : vector<64x128xf32>
    %2 = tpu.matmul %0, %1, %cst {dimension_numbers = #tpu.dot_dimension_numbers<[1], [1], [0], [0], [0, 0, 1, 0], [], []>} : vector<64x32xbf16>, vector<128x32xbf16>, vector<64x128xf32> -> vector<64x128xf32>
    %c0_3 = arith.constant 0 : index
    %c0_4 = arith.constant 0 : index
    %3 = vector.load %arg4[%c0_3, %c0_4] : memref<64x32xbf16, #tpu.memory_space<vmem>>, vector<64x32xbf16>
    %c0_5 = arith.constant 0 : index
    %c0_6 = arith.constant 0 : index
    %4 = vector.load %arg2[%c0_5, %c0_6] : memref<128x32xbf16, #tpu.memory_space<vmem>>, vector<128x32xbf16>
    %cst_7 = arith.constant dense<0.000000e+00> : vector<64x128xf32>
    %5 = tpu.matmul %3, %4, %cst_7 {dimension_numbers = #tpu.dot_dimension_numbers<[1], [1], [0], [0], [0, 0, 1, 0], [], []>} : vector<64x32xbf16>, vector<128x32xbf16>, vector<64x128xf32> -> vector<64x128xf32>
    %6 = arith.addf %2, %5 : vector<64x128xf32>
    %c0_8 = arith.constant 0 : index
    %c0_9 = arith.constant 0 : index
    %7 = vector.load %arg5[%c0_8, %c0_9] : memref<64x1xf32, #tpu.memory_space<vmem>>, vector<64x1xf32>
    %8 = vector.broadcast %7 : vector<64x1xf32> to vector<64x128xf32>
    %9 = arith.addf %6, %8 : vector<64x128xf32>
    %cst_10 = arith.constant 0.000000e+00 : f32
    %10 = vector.broadcast %cst_10 : f32 to vector<64x128xf32>
    %11 = arith.maximumf %9, %10 : vector<64x128xf32>
    %c0_11 = arith.constant 0 : index
    %c0_12 = arith.constant 0 : index
    %12 = vector.load %arg6[%c0_11, %c0_12] : memref<32x64xbf16, #tpu.memory_space<vmem>>, vector<32x64xbf16>
    %13 = arith.truncf %11 : vector<64x128xf32> to vector<64x128xbf16>
    %cst_13 = arith.constant dense<0.000000e+00> : vector<32x128xf32>
    %14 = tpu.matmul %12, %13, %cst_13 {dimension_numbers = #tpu.dot_dimension_numbers<[1], [0], [0], [1], [0, 0, 1, 1], [], []>} : vector<32x64xbf16>, vector<64x128xbf16>, vector<32x128xf32> -> vector<32x128xf32>
    %c0_14 = arith.constant 0 : index
    %c0_15 = arith.constant 0 : index
    %15 = vector.load %arg7[%c0_14, %c0_15] : memref<32x1xf32, #tpu.memory_space<vmem>>, vector<32x1xf32>
    %16 = vector.broadcast %15 : vector<32x1xf32> to vector<32x128xf32>
    %17 = arith.addf %14, %16 : vector<32x128xf32>
    %cst_16 = arith.constant 0.000000e+00 : f32
    %18 = vector.broadcast %cst_16 : f32 to vector<32x128xf32>
    %19 = arith.maximumf %17, %18 : vector<32x128xf32>
    %c0_17 = arith.constant 0 : index
    %c0_18 = arith.constant 0 : index
    %20 = vector.load %arg8[%c0_17, %c0_18] : memref<32x1xf32, #tpu.memory_space<vmem>>, vector<32x1xf32>
    %21 = vector.broadcast %20 : vector<32x1xf32> to vector<32x128xf32>
    %22 = arith.mulf %19, %21 : vector<32x128xf32>
    %cst_19 = arith.constant dense<0.000000e+00> : vector<128xf32>
    %23 = vector.multi_reduction <add>, %22, %cst_19 [0] : vector<32x128xf32> to vector<128xf32>
    %24 = vector.shape_cast %23 : vector<128xf32> to vector<1x128xf32>
    %c0_20 = arith.constant 0 : index
    %25 = memref.load %arg9[%c0_20] : memref<1xf32, #tpu.memory_space<smem>>
    %26 = vector.broadcast %25 : f32 to vector<1x128xf32>
    %27 = arith.addf %24, %26 : vector<1x128xf32>
    %28 = arith.negf %27 : vector<1x128xf32>
    %29 = math.exp %28 : vector<1x128xf32>
    %cst_21 = arith.constant 1.000000e+00 : f32
    %30 = vector.broadcast %cst_21 : f32 to vector<1x128xf32>
    %31 = arith.addf %30, %29 : vector<1x128xf32>
    %32 = arith.divf %30, %31 : vector<1x128xf32>
    %cst_22 = arith.constant 5.000000e+00 : f32
    %33 = vector.broadcast %cst_22 : f32 to vector<1x128xf32>
    %34 = arith.mulf %32, %33 : vector<1x128xf32>
    %cst_23 = arith.constant 5.000000e-01 : f32
    %35 = vector.broadcast %cst_23 : f32 to vector<1x128xf32>
    %36 = arith.addf %34, %35 : vector<1x128xf32>
    %c0_24 = arith.constant 0 : index
    %c0_25 = arith.constant 0 : index
    %37 = vector.load %arg10[%c0_24, %c0_25] : memref<1x128xf32, #tpu.memory_space<vmem>>, vector<1x128xf32>
    tpu.vector_store %arg10[%c0_24, %c0_25], %36 {strides = array<i32>} : memref<1x128xf32, #tpu.memory_space<vmem>>, vector<1x128xf32>,
    return
  }
  func.func @transform_0(%arg0: i32) -> (i32, i32) {
    %c0_i32 = arith.constant 0 : i32
    %c0_i32_0 = arith.constant 0 : i32
    return %arg0, %c0_i32 : i32, i32
  }
  func.func @transform_1(%arg0: i32) -> (i32, i32) {
    %c0_i32 = arith.constant 0 : i32
    %c0_i32_0 = arith.constant 0 : i32
    return %arg0, %c0_i32 : i32, i32
  }
  func.func @transform_2(%arg0: i32) -> (i32, i32) {
    %c0_i32 = arith.constant 0 : i32
    %c0_i32_0 = arith.constant 0 : i32
    %c0_i32_1 = arith.constant 0 : i32
    return %c0_i32, %c0_i32_0 : i32, i32
  }
  func.func @transform_3(%arg0: i32) -> (i32, i32) {
    %c0_i32 = arith.constant 0 : i32
    %c0_i32_0 = arith.constant 0 : i32
    %c0_i32_1 = arith.constant 0 : i32
    return %c0_i32, %c0_i32_0 : i32, i32
  }
  func.func @transform_4(%arg0: i32) -> (i32, i32) {
    %c0_i32 = arith.constant 0 : i32
    %c0_i32_0 = arith.constant 0 : i32
    %c0_i32_1 = arith.constant 0 : i32
    return %c0_i32, %c0_i32_0 : i32, i32
  }
  func.func @transform_5(%arg0: i32) -> (i32, i32) {
    %c0_i32 = arith.constant 0 : i32
    %c0_i32_0 = arith.constant 0 : i32
    %c0_i32_1 = arith.constant 0 : i32
    return %c0_i32, %c0_i32_0 : i32, i32
  }
  func.func @transform_6(%arg0: i32) -> (i32, i32) {
    %c0_i32 = arith.constant 0 : i32
    %c0_i32_0 = arith.constant 0 : i32
    %c0_i32_1 = arith.constant 0 : i32
    return %c0_i32, %c0_i32_0 : i32, i32
  }
  func.func @transform_7(%arg0: i32) -> (i32, i32) {
    %c0_i32 = arith.constant 0 : i32
    %c0_i32_0 = arith.constant 0 : i32
    %c0_i32_1 = arith.constant 0 : i32
    return %c0_i32, %c0_i32_0 : i32, i32
  }
  func.func @transform_8(%arg0: i32) -> i32 {
    %c0_i32 = arith.constant 0 : i32
    %c0_i32_0 = arith.constant 0 : i32
    return %c0_i32 : i32
  }
  func.func @transform_9(%arg0: i32) -> (i32, i32) {
    %c0_i32 = arith.constant 0 : i32
    %c0_i32_0 = arith.constant 0 : i32
    return %c0_i32, %arg0 : i32, i32
  }
}

</mosaic_0001>

<bundles_post_ra>
// kernel: tpu_custom_call.1
= control target key start
LH: loop header
LB: loop body
LE: loop exit
PB: predicated region body
PF: predicated region fallthrough
CT: control target
= control target key end

     0   :  { %vm143_vm0 = vcmask 261120   ;;  %v834_v4 = vmov 0   ;;  %s1060_s0 = inlined_call_operand.vmem [shape: bf16[128,32], index: 0, kind: input, shape index: {}]   ;;  %s1061_s1 = inlined_call_operand.vmem [shape: bf16[128,32], index: 1, kind: input, shape index: {}]   ;;  %s1062_s2 = inlined_call_operand.vmem [shape: bf16[64,32], index: 2, kind: input, shape index: {}]   ;;  %s1063_s3 = inlined_call_operand.vmem [shape: bf16[64,32], index: 3, kind: input, shape index: {}]   ;;  %s1064_s4 = inlined_call_operand.vmem [shape: f32[64,1], index: 4, kind: input, shape index: {}]   ;;  %s1065_s5 = inlined_call_operand.vmem [shape: bf16[32,64], index: 5, kind: input, shape index: {}]   ;;  %s1066_s6 = inlined_call_operand.vmem [shape: f32[32,1], index: 6, kind: input, shape index: {}]   ;;  %s1067_s7 = inlined_call_operand.vmem [shape: f32[32,1], index: 7, kind: input, shape index: {}]   ;;  %s1068_s8 = inlined_call_operand.<no memory space> [shape: f32[1], index: 8, kind: input, shape index: {}]   ;;  %s1069_s9 = inlined_call_operand.hbm [shape: f32[1,128], index: 9, kind: output, shape index: {}]  }
   0x1   :  { %v782_v0 = vld [vmem:[%s1061_s1 + $0x38] sm:$0xff]   ;;  %v784_v3 = vld [vmem:[%s1061_s1 + $0x30] sm:$0xff]   ;;  %780 = vset.pattern.permute.xlu0 %v834_v4  ;;  %781 = vset.pattern.permute.xlu1 %v834_v4  ;;  %v786_v8 = vld [vmem:[%s1061_s1 + $0x28] sm:$0xff]  }
   0x2   :  { %v783_v1 = vld [vmem:[%s1060_s0 + $0x38] sm:$0xff]   ;;  %762 = vmatprep.subr.msk.bf16.mxu0 %vm143_vm0, %v782_v0  ;;  %v178_v2 = vsel %vm143_vm0, %v782_v0, 0  ;;  %v785_v6 = vld [vmem:[%s1060_s0 + $0x30] sm:$0xff]   ;;  %v175_v7 = vsel %vm143_vm0, %v784_v3, 0  ;;  %v787_v10 = vld [vmem:[%s1060_s0 + $0x28] sm:$0xff]   ;;  %v172_v13 = vsel %vm143_vm0, %v786_v8, 0 }
   0x3   :  { %770 = vmatprep.subr.msk.bf16.mxu1 %vm143_vm0, %v783_v1  ;;  %703 = vmatpush3.bf16.xpose.msra.mxu0 %v178_v2  ;;  %v339_v5 = vsel %vm143_vm0, %v783_v1, 0  ;;  %v336_v9 = vsel %vm143_vm0, %v785_v6, 0  ;;  %v788_v11 = vld [vmem:[%s1061_s1 + $0x20] sm:$0xff]   ;;  %v333_v15 = vsel %vm143_vm0, %v787_v10, 0  ;;  %v790_v18 = vld [vmem:[%s1061_s1 + $0x18] sm:$0xff]   ;;  %v412_v19 = vld [vmem:[%s1064_s4 + $0x30] sm:$0xff] }
   0x4   :  { %727 = vmatpush3.bf16.xpose.msra.mxu1 %v339_v5  ;;  %763 = vmatprep.subr.msk.bf16.mxu0 %vm143_vm0, %v784_v3  ;;  %v789_v12 = vld [vmem:[%s1060_s0 + $0x20] sm:$0xff]   ;;  %v169_v17 = vsel %vm143_vm0, %v788_v11, 0  ;;  %v791_v22 = vld [vmem:[%s1060_s0 + $0x18] sm:$0xff]   ;;  %v411_v24 = vld [vmem:[%s1064_s4 + $0x28] sm:$0xff] }
   0x5   :  { %771 = vmatprep.subr.msk.bf16.mxu1 %vm143_vm0, %v785_v6  ;;  %v798_v14 = vld [vmem:[%s1063_s3] sm:$0xff]   ;;  %v330_v21 = vsel %vm143_vm0, %v789_v12, 0  ;;  %446 = vperm.xlu0 %780, %v412_v19   ;;  %v413_v23 = vld [vmem:[%s1064_s4 + $0x38] sm:$0xff]  ;;  %v408_v25 = vld [vmem:[%s1064_s4 + $0x10] sm:$0xff] }
   0x6   :  { %v799_v16 = vld [vmem:[%s1062_s2] sm:$0xff]   ;;  %718 = vmatprep.mubr.msk.bf16.mxu0 %vm143_vm0, %v798_v14 }
   0x7   :  { %742 = vmatprep.mubr.msk.bf16.mxu1 %vm143_vm0, %v799_v16  ;;  %v410_v20 = vld [vmem:[%s1064_s4 + $0x20] sm:$0xff] }
   0x8   :  { %436 = vperm.xlu1 %781, %v410_v20  }
   0x9   :  { %451 = vperm.xlu0 %780, %v413_v23  }
   0xb   :  { %705 = vmatpush3.bf16.xpose.msra.mxu0 %v175_v7 }
   0xc   :  { %729 = vmatpush3.bf16.xpose.msra.mxu1 %v336_v9  ;;  %764 = vmatprep.subr.msk.bf16.mxu0 %vm143_vm0, %v786_v8 }
   0xd   :  { %772 = vmatprep.subr.msk.bf16.mxu1 %vm143_vm0, %v787_v10  ;;  %441 = vperm.xlu1 %781, %v411_v24  }
  0x13   :  { %707 = vmatpush3.bf16.xpose.msra.mxu0 %v172_v13 }
  0x14   :  { %731 = vmatpush3.bf16.xpose.msra.mxu1 %v333_v15  ;;  %765 = vmatprep.subr.msk.bf16.mxu0 %vm143_vm0, %v788_v11 }
  0x15   :  { %773 = vmatprep.subr.msk.bf16.mxu1 %vm143_vm0, %v789_v12 }
  0x1b   :  { %709 = vmatpush3.bf16.xpose.msra.mxu0 %v169_v17 }
  0x1c   :  { %733 = vmatpush3.bf16.xpose.msra.mxu1 %v330_v21  ;;  %766 = vmatprep.subr.msk.bf16.mxu0 %vm143_vm0, %v790_v18 }
  0x1d   :  { %774 = vmatprep.subr.msk.bf16.mxu1 %vm143_vm0, %v791_v22 }
  0x1e   :  { %15 = vsyncpa [#allocation4], 0  ;;  %v409_v26 = vld [vmem:[%s1064_s4 + $0x18] sm:$0xff]  ;;  %v166_v27 = vsel %vm143_vm0, %v790_v18, 0  ;;  %v792_v28 = vld [vmem:[%s1061_s1 + $0x10] sm:$0xff]   ;;  %v327_v29 = vsel %vm143_vm0, %v791_v22, 0  ;;  %426 = vperm.xlu0 %780, %v408_v25  }
  0x1f   :  { %v793_v30 = vld [vmem:[%s1060_s0 + $0x10] sm:$0xff]   ;;  %431 = vperm.xlu1 %781, %v409_v26   ;;  %v406_v31 = vld [vmem:[%s1064_s4] sm:$0xff]  ;;  %v407_v32 = vld [vmem:[%s1064_s4 + $0x8] sm:$0xff]  ;;  %v163_v35 = vsel %vm143_vm0, %v792_v28, 0  ;;  %vm512_vm1 = vcmask 523264   ;;  %s835_s23 = smov [#allocation3]  }
  0x20   :  { %v478_v33 = vld [vmem:[%s1066_s6] sm:$0xff]  ;;  %v479_v34 = vld [vmem:[%s1066_s6 + $0x8] sm:$0xff]  ;;  %v324_v37 = vsel %vm143_vm0, %v793_v30, 0  ;;  %v480_v39 = vld [vmem:[%s1066_s6 + $0x10] sm:$0xff]  ;;  %s627_s24 = sshll.u32 %s835_s23, 4  ;;  %s628_s24 = int_to_ptr.vmem [resolvable:$true] %s627_s24 }
  0x21   :  { %v794_v36 = vld [vmem:[%s1061_s1 + $0x8] sm:$0xff]   ;;  %v481_v40 = vld [vmem:[%s1066_s6 + $0x18] sm:$0xff]  ;;  %v572_v41 = vld [vmem:[%s1067_s7] sm:$0xff]  ;;  %s812_s25 = scalar_lea.vmem %s628_s24, 16  ;;  %s816_s26 = scalar_lea.vmem %s628_s24, 32 }
  0x22   :  { %416 = vperm.xlu0 %780, %v406_v31   ;;  %v795_v38 = vld [vmem:[%s1060_s0 + $0x8] sm:$0xff]   ;;  %v160_v43 = vsel %vm143_vm0, %v794_v36, 0  ;;  %v796_v44 = vld [vmem:[%s1061_s1] sm:$0xff]   ;;  %v574_v47 = vld [vmem:[%s1067_s7 + $0x10] sm:$0xff]  ;;  %p813_p0 = scmp.ne.s32.totalorder %s628_s24, %s812_s25  ;;  %p817_p1 = scmp.lt.s32.totalorder %s628_s24, %s628_s24 }
  0x23   :  { %711 = vmatpush3.bf16.xpose.msra.mxu0 %v166_v27  ;;  %421 = vperm.xlu1 %781, %v407_v32   ;;  %v573_v42 = vld [vmem:[%s1067_s7 + $0x8] sm:$0xff]  ;;  %v321_v45 = vsel %vm143_vm0, %v795_v38, 0  ;;  %v797_v46 = vld [vmem:[%s1060_s0] sm:$0xff]   ;;  %v575_v48 = vld [vmem:[%s1067_s7 + $0x18] sm:$0xff]  ;;  %v157_v49 = vsel %vm143_vm0, %v796_v44, 0  ;;  %p818_p2 = scmp.lt.s32.totalorder %s816_s26, %s812_s25 }
  0x24   :  { %735 = vmatpush3.bf16.xpose.msra.mxu1 %v327_v29  ;;  %767 = vmatprep.subr.msk.bf16.mxu0 %vm143_vm0, %v792_v28  ;;  %v318_v50 = vsel %vm143_vm0, %v797_v46, 0  ;;  %v800_v51 = vld [vmem:[%s1063_s3 + $0x8] sm:$0xff]   ;;  %v802_v53 = vld [vmem:[%s1063_s3 + $0x10] sm:$0xff]   ;;  %v804_v55 = vld [vmem:[%s1063_s3 + $0x18] sm:$0xff]  }
  0x25   :  { %775 = vmatprep.subr.msk.bf16.mxu1 %vm143_vm0, %v793_v30  ;;  %v801_v52 = vld [vmem:[%s1062_s2 + $0x8] sm:$0xff]   ;;  %v803_v54 = vld [vmem:[%s1062_s2 + $0x10] sm:$0xff]   ;;  %v805_v56 = vld [vmem:[%s1062_s2 + $0x18] sm:$0xff]   ;;  %p819_p3 = por %p818_p2, %p817_p1 }
  0x26   :  { %484 = vperm.xlu0 %780, %v478_v33   ;;  %v806_v57 = vld [vmem:[%s1065_s5] sm:$0xff]  }
  0x27   :  { %489 = vperm.xlu1 %781, %v479_v34   ;;  %p820_p4 = pnand %p819_p3, %p813_p0 }
  0x2a   :  { %494 = vperm.xlu0 %780, %v480_v39  }
  0x2b   :  { %713 = vmatpush3.bf16.xpose.msra.mxu0 %v163_v35  ;;  %499 = vperm.xlu1 %781, %v481_v40  }
  0x2c   :  { %737 = vmatpush3.bf16.xpose.msra.mxu1 %v324_v37  ;;  %768 = vmatprep.subr.msk.bf16.mxu0 %vm143_vm0, %v794_v36 }
  0x2d   :  { %776 = vmatprep.subr.msk.bf16.mxu1 %vm143_vm0, %v795_v38 }
  0x2e   :  { %578 = vperm.xlu0 %780, %v572_v41  }
  0x2f   :  { %583 = vperm.xlu1 %781, %v573_v42  }
  0x32   :  { %588 = vperm.xlu0 %780, %v574_v47  }
  0x33   :  { %715 = vmatpush3.bf16.xpose.msra.mxu0 %v160_v43  ;;  %593 = vperm.xlu1 %781, %v575_v48  }
  0x34   :  { %739 = vmatpush3.bf16.xpose.msra.mxu1 %v321_v45  ;;  %769 = vmatprep.subr.msk.bf16.mxu0 %vm143_vm0, %v796_v44 }
  0x35   :  { %777 = vmatprep.subr.msk.bf16.mxu1 %vm143_vm0, %v797_v46  ;;  %v807_v46 = vld [vmem:[%s1065_s5 + $0x8] sm:$0xff]  }
  0x3b   :  { %717 = vmatpush3.bf16.xpose.msra.mxu0 %v157_v49 }
  0x3c   :  { %741 = vmatpush3.bf16.xpose.msra.mxu1 %v318_v50 }
  0x42   :  { %719 = vmatmul.mubr.msk.bf16.vlgmr.msra.gmra.mxu0 %vm143_vm0, %v800_v51 }
  0x43   :  { %743 = vmatmul.mubr.msk.bf16.vlgmr.msra.gmra.mxu1 %vm143_vm0, %v801_v52  ;;  %722 = vmatprep.mubr.msk.bf16.mxu0 %vm143_vm0, %v802_v53 }
  0x44   :  { %746 = vmatprep.mubr.msk.bf16.mxu1 %vm143_vm0, %v803_v54 }
  0x4a   :  { %723 = vmatmul.mubr.msk.bf16.gmra.mxu0 %vm143_vm0, %v804_v55 }
  0x4b   :  { %747 = vmatmul.mubr.msk.bf16.gmra.mxu1 %vm143_vm0, %v805_v56  ;;  %758 = vmatprep.mubr.msk.bf16.mxu0 %vm512_vm1, %v806_v57 }
  0x80   :  { %v447_v0 = vpop.permute.xlu0 %446 }
  0x83   :  { %v437_v61 = vpop.permute.xlu1 %436 }
  0x84   :  { %v452_v9 = vpop.permute.xlu0 %451 }
  0x88   :  { %v442_v5 = vpop.permute.xlu1 %441 }
  0x99   :  { %v427_v24 = vpop.permute.xlu0 %426 }
  0x9a   :  { %v432_v18 = vpop.permute.xlu1 %431 }
  0x9d   :  { %v417_v39 = vpop.permute.xlu0 %416 }
  0x9e   :  { %v422_v35 = vpop.permute.xlu1 %421 }
  0xa1   :  { %v485_v47 = vpop.permute.xlu0 %484 }
  0xa2   :  { %v490_v48 = vpop.permute.xlu1 %489 }
  0xa5   :  { %v495_v49 = vpop.permute.xlu0 %494 }
  0xa6   :  { %v500_v51 = vpop.permute.xlu1 %499 }
  0xa9   :  { %v579_v56 = vpop.permute.xlu0 %578 }
 0x102   :  { %v720_v58 = vpop.f32.mrf.mxu0 }
 0x103   :  { %v744_v59 = vpop.f32.mrf.mxu1 }
 0x104   :  { %v214_v60 = vpop.f32.mrf.mxu0  ;;  %v384_v19 = vadd.f32 %v744_v59, %v720_v58 }
 0x105   :  { %v375_v62 = vpop.f32.mrf.mxu1 }
 0x106   :  { %v721_v63 = vpop.f32.mrf.mxu0  ;;  %v456_v30 = vadd.f32 %v427_v24, %v384_v19  ;;  %v376_v31 = vadd.f32 %v375_v62, %v214_v60 }
 0x107   :  { %v745_v1 = vpop.f32.mrf.mxu1 }
 0x108   :  { %v217_v2 = vpop.f32.mrf.mxu0  ;;  %v387_v13 = vadd.f32 %v745_v1, %v721_v63  ;;  %v464_v40 = vmax.f32 %v456_v30, 0.0  ;;  %v454_v41 = vadd.f32 %v417_v39, %v376_v31 }
 0x109   :  { %v378_v3 = vpop.f32.mrf.mxu1 }
 0x10a   :  { %v724_v4 = vpop.f32.mrf.mxu0  ;;  %v457_v25 = vadd.f32 %v432_v18, %v387_v13  ;;  %v379_v26 = vadd.f32 %v378_v3, %v217_v2  ;;  %v462_v44 = vmax.f32 %v454_v41, 0.0  ;;  %v589_v3 = vpop.permute.xlu0 %588 }
 0x10b   :  { %v748_v6 = vpop.f32.mrf.mxu1 }
 0x10c   :  { %v400_v7 = vadd.f32 %v748_v6, %v724_v4  ;;  %v230_v8 = vpop.f32.mrf.mxu0  ;;  %v465_v36 = vmax.f32 %v457_v25, 0.0  ;;  %v455_v37 = vadd.f32 %v422_v35, %v379_v26 }
 0x10d   :  { %v391_v10 = vpop.f32.mrf.mxu1 }
 0x10e   :  { %v392_v11 = vadd.f32 %v391_v10, %v230_v8  ;;  %v725_v12 = vpop.f32.mrf.mxu0  ;;  %v460_v15 = vadd.f32 %v447_v0, %v400_v7  ;;  %v463_v42 = vmax.f32 %v455_v37, 0.0  ;;  %v475_v43 = vpack.c.bf16 %v465_v36, %v464_v40 }
 0x10f   :  { %v749_v14 = vpop.f32.mrf.mxu1 }
 0x110   :  { %v403_v16 = vadd.f32 %v749_v14, %v725_v12  ;;  %v233_v17 = vpop.f32.mrf.mxu0  ;;  %v458_v21 = vadd.f32 %v437_v61, %v392_v11  ;;  %v468_v27 = vmax.f32 %v460_v15, 0.0  ;;  %v474_v45 = vpack.c.bf16 %v463_v42, %v462_v44  ;;  %v584_v61 = vpop.permute.xlu1 %583 }
 0x111   :  { %v394_v20 = vpop.f32.mrf.mxu1  ;;  %v610_v15 = vstv %s1068_s8 }
 0x112   :  { %v461_v22 = vadd.f32 %v452_v9, %v403_v16  ;;  %v395_v23 = vadd.f32 %v394_v20, %v233_v17  ;;  %v466_v32 = vmax.f32 %v458_v21, 0.0 }
 0x114   :  { %v469_v28 = vmax.f32 %v461_v22, 0.0  ;;  %v459_v29 = vadd.f32 %v442_v5, %v395_v23  ;;  %v594_v6 = vpop.permute.xlu1 %593 }
 0x116   :  { %v467_v33 = vmax.f32 %v459_v29, 0.0  ;;  %v477_v34 = vpack.c.bf16 %v469_v28, %v468_v27 }
 0x118   :  { %750 = vmatprep.subr.bf16.mxu0 %v477_v34  ;;  %v476_v38 = vpack.c.bf16 %v467_v33, %v466_v32 }
 0x119   :  { %751 = vmatpush3.bf16.msra.mxu0 %v477_v34 }
 0x11a   :  { %752 = vmatprep.subr.bf16.mxu0 %v476_v38 }
 0x11d   :  { %753 = vmatpush3.bf16.msra.mxu0 %v476_v38 }
 0x11e   :  { %754 = vmatprep.subr.bf16.mxu0 %v475_v43 }
 0x121   :  { %755 = vmatpush3.bf16.msra.mxu0 %v475_v43 }
 0x122   :  { %756 = vmatprep.subr.bf16.mxu0 %v474_v45 }
 0x125   :  { %757 = vmatpush3.bf16.msra.mxu0 %v474_v45 }
 0x128   :  { %759 = vmatmul.mubr.msk.bf16.vlgmr.msra.gmra.mxu0 %vm512_vm1, %v807_v46 }
 0x1e8   :  { %v760_v50 = vpop.f32.mrf.mxu0 }
 0x1e9   :  { %v562_v55 = vadd.f32 %v760_v50, %v495_v49 }
 0x1ea   :  { %v553_v52 = vpop.f32.mrf.mxu0 }
 0x1eb   :  { %v554_v53 = vadd.f32 %v553_v52, %v485_v47  ;;  %v570_v62 = vmax.f32 %v562_v55, 0.0 }
 0x1ec   :  { %v761_v54 = vpop.f32.mrf.mxu0 }
 0x1ed   :  { %v568_v58 = vmax.f32 %v554_v53, 0.0  ;;  %v565_v59 = vadd.f32 %v761_v54, %v500_v51  ;;  %v598_v4 = vmul.f32 %v589_v3, %v570_v62 }
 0x1ee   :  { %v556_v57 = vpop.f32.mrf.mxu0 }
 0x1ef   :  { %v557_v60 = vadd.f32 %v556_v57, %v490_v48  ;;  %v596_v0 = vmul.f32 %v579_v56, %v568_v58  ;;  %v571_v1 = vmax.f32 %v565_v59, 0.0 }
 0x1f1   :  { %v569_v63 = vmax.f32 %v557_v60, 0.0  ;;  %v599_v7 = vmul.f32 %v594_v6, %v571_v1 }
 0x1f3   :  { %v597_v2 = vmul.f32 %v584_v61, %v569_v63 }
 0x1f5   :  { %v600_v5 = vadd.f32 %v597_v2, %v596_v0 }
 0x1f7   :  { %v601_v8 = vadd.f32 %v600_v5, %v598_v4 }
 0x1f9   :  { %v602_v9 = vadd.f32 %v601_v8, %v599_v7 }
 0x1fb   :  { %v603_v10 = vrot.slane %v602_v9, 4 }
 0x1fd   :  { %v604_v11 = vadd.f32 %v603_v10, %v602_v9 }
 0x1ff   :  { %v605_v12 = vrot.slane %v604_v11, 2 }
 0x201   :  { %v606_v13 = vadd.f32 %v605_v12, %v604_v11 }
 0x203   :  { %v607_v14 = vrot.slane %v606_v13, 1 }
 0x205   :  { %v608_v16 = vadd.f32 %v607_v14, %v606_v13 }
 0x207   :  { %v611_v17 = vadd.f32 %v610_v15, %v608_v16 }
 0x209   :  { %v671_v18 = vmul.f32 -1.442695, %v611_v17 }
 0x20b   :  { %808 = vpow2.f32 %v671_v18 }
 0x218   :  { %v809_v19 = vpop.eup %808 }
 0x219   :  { %v615_v20 = vadd.f32 1.0, %v809_v19 }
 0x21b   :  { %810 = vrcp.f32 %v615_v20 }
 0x228   :  { %v811_v21 = vpop.eup %810 }
 0x229   :  { %v618_v22 = vmul.f32 5.0, %v811_v21 }
 0x22b   :  { %v619_v23 = vadd.f32 0.5, %v618_v22 }
 0x22d   :  { %620 = vst [vmem:[#allocation3] sm:$0x1] %v619_v23 }
 0x22e   :  { %823 = shalt.err (!%p820_p4)
}
 0x22f   :  { %630 = dma.vmem_to_hbm [thread:$0]  %s628_s24, 16, %s1069_s9, [#allocation4]  }
 0x230   :  { %832 = dma.done.wait [#allocation4], 16  }
 0x231   :  { %833 = vsyncadd [#allocation4], 4294967280 }
 0x232   :  { %634 = vsyncpa [#allocation4], 1 }

</bundles_post_ra>
